<compile_context>
chip_gen: v7x
topology: tpu7x:2x2x1
jax: 0.10.0
libtpu: 0.0.40
codegen_flags: <defaults>
</compile_context>

<pallas_src>
import functools

import jax
import jax.numpy as jnp
from jax import lax
from jax.experimental import pallas as pl
from jax.experimental.pallas import tpu as pltpu


def gc_kernel(x_ref, wm_ref, bm_ref, w1_ref, b1_ref, gamma_ref, beta_ref,
              w2_ref, b2_ref, o_ref, *, hw_valid):
    f32 = jnp.float32
    nb, _, hwp = x_ref.shape          # (Bt, C, HWp)

    # Small parameters: load once per grid step (tiny, stay in vregs).
    wm = wm_ref[...].astype(f32)      # (C, 1)
    w1 = w1_ref[...].astype(f32)      # (P, C)
    b1 = b1_ref[...].astype(f32)      # (P, 1)
    gam = gamma_ref[...].astype(f32)  # (P, 1)
    bet = beta_ref[...].astype(f32)   # (P, 1)
    w2 = w2_ref[...].astype(f32)      # (C, P)
    b2 = b2_ref[...].astype(f32)      # (C, 1)
    bm = bm_ref[0]                    # scalar from SMEM

    # Lane-validity mask (only emitted when the spatial axis was padded).
    if hw_valid != hwp:
        lane = lax.broadcasted_iota(jnp.int32, (1, hwp), 1)
        valid = lane < hw_valid
    else:
        valid = None

    # Statically unrolled loop over the Bt batch elements of this block; all
    # the heavy (C, HWp) work is vectorized, the loop only replicates the tiny
    # softmax / transform tail.
    for b in range(nb):
        # -- spatial pool: 1x1 conv C->1 as VPU broadcast-multiply + XLU
        #    sublane reduce (avoids a degenerate M=1 f32 matmul on the MXU).
        #    x_ref is re-read for each use instead of holding an f32 copy.
        logits = jnp.sum(x_ref[b].astype(f32) * wm, axis=0, keepdims=True) + bm
        if valid is not None:
            logits = jnp.where(valid, logits, f32(-1e30))

        mmax = jnp.max(logits, axis=-1, keepdims=True)
        e = jnp.exp(logits - mmax)
        p = e * pl.reciprocal(jnp.sum(e, axis=-1, keepdims=True), approx=False)

        # -- context: weighted spatial sum (lane reduce on the XLU)
        ctx = jnp.sum(x_ref[b].astype(f32) * p, axis=-1, keepdims=True)  # (C, 1)

        # -- transform: conv1x1 C->P, LayerNorm(P) (biased var, eps=1e-5,
        #    matching torch), ReLU, conv1x1 P->C — all tiny.
        t1 = jnp.dot(w1, ctx, preferred_element_type=f32) + b1           # (P, 1)
        mu = jnp.mean(t1)
        var = jnp.mean((t1 - mu) * (t1 - mu))
        t1n = (t1 - mu) * lax.rsqrt(var + 1e-5)
        t1n = jnp.maximum(t1n * gam + bet, 0.0)
        t2 = jnp.dot(w2, t1n, preferred_element_type=f32) + b2           # (C, 1)

        # -- residual add in the I/O dtype (bf16 stays bf16 on v6e/v7x)
        o_ref[b] = x_ref[b] + t2.astype(o_ref.dtype)


def gc_module_forward(x_nchw, params, *, vmem_tile_budget_bytes=4 << 20):
    B, C, H, W = x_nchw.shape
    HW = H * W
    P = params["w1"].shape[0]

    # Lane-dense spatial axis: pad HW up to a multiple of 128 (padded lanes
    # are masked out of the softmax inside the kernel and sliced off after).
    HWp = max(128, ((HW + 127) // 128) * 128)
    x = x_nchw.reshape(B, C, HW)
    if HWp != HW:
        x = jnp.pad(x, ((0, 0), (0, 0), (0, HWp - HW)))

    # Batch elements per grid step: amortize the ~0.35us per-step overhead,
    # but cap the x tile by a VMEM budget (the tile is double-buffered as both
    # input and output => ~4x the tile is live; 4 MiB keeps us well inside
    # v7x's 64 MiB VMEM) and keep >= 2 grid steps so both v7x TCs get work.
    itemsize = jnp.dtype(x.dtype).itemsize
    per_b = C * HWp * itemsize
    bt_cap = max(1, vmem_tile_budget_bytes // per_b)
    if B >= 2:
        bt_cap = min(bt_cap, B // 2)
    bt = max(d for d in range(1, B + 1) if B % d == 0 and d <= bt_cap)
    grid = (B // bt,)

    # Kernel-friendly parameter layouts (host-side reshapes are free).
    f32 = jnp.float32
    wm = params["wm"].reshape(C, 1).astype(f32)
    bm = params["bm"].reshape((1,)).astype(f32)
    w1 = params["w1"].astype(f32)                 # (P, C)
    b1 = params["b1"].reshape(P, 1).astype(f32)
    gamma = params["gamma"].reshape(P, 1).astype(f32)
    beta = params["beta"].reshape(P, 1).astype(f32)
    w2 = params["w2"].astype(f32)                 # (C, P)
    b2 = params["b2"].reshape(C, 1).astype(f32)

    def full(shape):
        return pl.BlockSpec(shape, lambda i: tuple(0 for _ in shape))

    out = pl.pallas_call(
        functools.partial(gc_kernel, hw_valid=HW),
        out_shape=jax.ShapeDtypeStruct((B, C, HWp), x.dtype),
        grid_spec=pltpu.PrefetchScalarGridSpec(
            num_scalar_prefetch=0,
            grid=grid,
            in_specs=[
                pl.BlockSpec((bt, C, HWp), lambda i: (i, 0, 0)),    # x
                full((C, 1)),                                       # conv_mask W
                pl.BlockSpec(memory_space=pltpu.MemorySpace.SMEM),  # conv_mask b (scalar)
                full((P, C)),                                       # transform conv1 W
                full((P, 1)),                                       # transform conv1 b
                full((P, 1)),                                       # LayerNorm gamma
                full((P, 1)),                                       # LayerNorm beta
                full((C, P)),                                       # transform conv2 W
                full((C, 1)),                                       # transform conv2 b
            ],
            out_specs=pl.BlockSpec((bt, C, HWp), lambda i: (i, 0, 0)),
        ),
        compiler_params=pltpu.CompilerParams(
            dimension_semantics=("parallel",),
            vmem_limit_bytes=32 * 1024 * 1024),
    )(x, wm, bm, w1, b1, gamma, beta, w2, b2)

    return out[:, :, :HW].reshape(B, C, H, W)


def reference_forward(x, params):
    # Pure-JAX reference mirroring the PyTorch module.
    B, C, H, W = x.shape
    HW = H * W
    xf = x.reshape(B, C, HW).astype(jnp.float32)
    logits = jnp.einsum("oc,bcs->bs", params["wm"].astype(jnp.float32), xf) + params["bm"][0]
    p = jax.nn.softmax(logits, axis=-1)                                # (B, HW)
    ctx = jnp.einsum("bcs,bs->bc", xf, p)                              # (B, C)
    t1 = jnp.einsum("pc,bc->bp", params["w1"].astype(jnp.float32), ctx) + params["b1"][None, :]
    mu = jnp.mean(t1, axis=-1, keepdims=True)
    var = jnp.mean((t1 - mu) ** 2, axis=-1, keepdims=True)
    t1n = (t1 - mu) / jnp.sqrt(var + 1e-5)
    t1n = t1n * params["gamma"][None, :] + params["beta"][None, :]
    t1n = jnp.maximum(t1n, 0.0)
    t2 = jnp.einsum("cp,bp->bc", params["w2"].astype(jnp.float32), t1n) + params["b2"][None, :]
    return (xf + t2[:, :, None]).reshape(B, C, H, W).astype(x.dtype)


if __name__ == "__main__":
    B, C = 2, 64                      # inplanes=64, ratio=16 -> planes=4
    P = C // 16

    key = jax.random.PRNGKey(0)
    ks = jax.random.split(key, 8)
    params = {
        "wm":    0.1 * jax.random.normal(ks[0], (1, C), dtype=jnp.float32),
        "bm":    0.1 * jax.random.normal(ks[1], (1,), dtype=jnp.float32),
        "w1":    0.1 * jax.random.normal(ks[2], (P, C), dtype=jnp.float32),
        "b1":    0.1 * jax.random.normal(ks[3], (P,), dtype=jnp.float32),
        "gamma": jnp.ones((P,), dtype=jnp.float32),
        "beta":  jnp.zeros((P,), dtype=jnp.float32),
        "w2":    0.1 * jax.random.normal(ks[4], (C, P), dtype=jnp.float32),
        "b2":    0.1 * jax.random.normal(ks[5], (C,), dtype=jnp.float32),
    }

    # Lane-dense case: HW = 256 (already a multiple of 128).
    x1 = jax.random.normal(ks[6], (B, C, 16, 16), dtype=jnp.float32)
    out1 = jax.block_until_ready(gc_module_forward(x1, params))
    ref1 = reference_forward(x1, params)
    assert out1.shape == x1.shape
    assert jnp.allclose(out1, ref1, atol=1e-4, rtol=1e-4), "mismatch vs reference (16x16)"

    # Non-multiple-of-128 spatial: exercises the padding + lane-mask path.
    x2 = jax.random.normal(ks[7], (B, C, 10, 10), dtype=jnp.float32)
    out2 = jax.block_until_ready(gc_module_forward(x2, params))
    ref2 = reference_forward(x2, params)
    assert out2.shape == x2.shape
    assert jnp.allclose(out2, ref2, atol=1e-4, rtol=1e-4), "mismatch vs reference (10x10)"

    print("KERNEL_OK")
</pallas_src>

<mosaic_0001>
module attributes {stable_mosaic.version = 11 : i64} {
  func.func @gc_kernel(%arg0: i32, %arg1: memref<1x64x256xf32, #tpu.memory_space<vmem>>, %arg2: memref<64x1xf32, #tpu.memory_space<vmem>>, %arg3: memref<1xf32, #tpu.memory_space<smem>>, %arg4: memref<4x64xf32, #tpu.memory_space<vmem>>, %arg5: memref<4x1xf32, #tpu.memory_space<vmem>>, %arg6: memref<4x1xf32, #tpu.memory_space<vmem>>, %arg7: memref<4x1xf32, #tpu.memory_space<vmem>>, %arg8: memref<64x4xf32, #tpu.memory_space<vmem>>, %arg9: memref<64x1xf32, #tpu.memory_space<vmem>>, %arg10: memref<1x64x256xf32, #tpu.memory_space<vmem>>) attributes {dimension_semantics = [#tpu.dimension_semantics<parallel>], iteration_bounds = array<i64: 2>, scalar_prefetch = 0 : i64, scratch_operands = 0 : i64, tpu.core_type = #tpu.core_type<tc>, window_params = [{transform_indices = @transform_0, window_bounds = array<i64: 1, 64, 256>}, {pipeline_mode = #tpu.pipeline_mode<synchronous>, transform_indices = @transform_1, window_bounds = array<i64: 64, 1>}, {transform_indices = @transform_2, window_bounds = array<i64: 1>}, {pipeline_mode = #tpu.pipeline_mode<synchronous>, transform_indices = @transform_3, window_bounds = array<i64: 4, 64>}, {pipeline_mode = #tpu.pipeline_mode<synchronous>, transform_indices = @transform_4, window_bounds = array<i64: 4, 1>}, {pipeline_mode = #tpu.pipeline_mode<synchronous>, transform_indices = @transform_5, window_bounds = array<i64: 4, 1>}, {pipeline_mode = #tpu.pipeline_mode<synchronous>, transform_indices = @transform_6, window_bounds = array<i64: 4, 1>}, {pipeline_mode = #tpu.pipeline_mode<synchronous>, transform_indices = @transform_7, window_bounds = array<i64: 64, 4>}, {pipeline_mode = #tpu.pipeline_mode<synchronous>, transform_indices = @transform_8, window_bounds = array<i64: 64, 1>}, {transform_indices = @transform_9, window_bounds = array<i64: 1, 64, 256>}]} {
    %c0 = arith.constant 0 : index
    %c0_0 = arith.constant 0 : index
    %0 = vector.load %arg2[%c0, %c0_0] : memref<64x1xf32, #tpu.memory_space<vmem>>, vector<64x1xf32>
    %c0_1 = arith.constant 0 : index
    %c0_2 = arith.constant 0 : index
    %1 = vector.load %arg4[%c0_1, %c0_2] : memref<4x64xf32, #tpu.memory_space<vmem>>, vector<4x64xf32>
    %c0_3 = arith.constant 0 : index
    %c0_4 = arith.constant 0 : index
    %2 = vector.load %arg5[%c0_3, %c0_4] : memref<4x1xf32, #tpu.memory_space<vmem>>, vector<4x1xf32>
    %c0_5 = arith.constant 0 : index
    %c0_6 = arith.constant 0 : index
    %3 = vector.load %arg6[%c0_5, %c0_6] : memref<4x1xf32, #tpu.memory_space<vmem>>, vector<4x1xf32>
    %c0_7 = arith.constant 0 : index
    %c0_8 = arith.constant 0 : index
    %4 = vector.load %arg7[%c0_7, %c0_8] : memref<4x1xf32, #tpu.memory_space<vmem>>, vector<4x1xf32>
    %c0_9 = arith.constant 0 : index
    %c0_10 = arith.constant 0 : index
    %5 = vector.load %arg8[%c0_9, %c0_10] : memref<64x4xf32, #tpu.memory_space<vmem>>, vector<64x4xf32>
    %c0_11 = arith.constant 0 : index
    %c0_12 = arith.constant 0 : index
    %6 = vector.load %arg9[%c0_11, %c0_12] : memref<64x1xf32, #tpu.memory_space<vmem>>, vector<64x1xf32>
    %c0_13 = arith.constant 0 : index
    %7 = memref.load %arg3[%c0_13] : memref<1xf32, #tpu.memory_space<smem>>
    %c0_14 = arith.constant 0 : index
    %c0_15 = arith.constant 0 : index
    %c0_16 = arith.constant 0 : index
    %8 = vector.load %arg1[%c0_14, %c0_15, %c0_16] : memref<1x64x256xf32, #tpu.memory_space<vmem>>, vector<1x64x256xf32>
    %9 = vector.shape_cast %8 : vector<1x64x256xf32> to vector<64x256xf32>
    %10 = vector.broadcast %0 : vector<64x1xf32> to vector<64x256xf32>
    %11 = arith.mulf %9, %10 : vector<64x256xf32>
    %cst = arith.constant dense<0.000000e+00> : vector<256xf32>
    %12 = vector.multi_reduction <add>, %11, %cst [0] : vector<64x256xf32> to vector<256xf32>
    %13 = vector.shape_cast %12 : vector<256xf32> to vector<1x256xf32>
    %14 = vector.broadcast %7 : f32 to vector<1x256xf32>
    %15 = arith.addf %13, %14 : vector<1x256xf32>
    %cst_17 = arith.constant dense<0xFF800000> : vector<1xf32>
    %16 = vector.multi_reduction <maximumf>, %15, %cst_17 [1] : vector<1x256xf32> to vector<1xf32>
    %17 = vector.shape_cast %16 : vector<1xf32> to vector<1x1xf32>
    %18 = vector.broadcast %17 : vector<1x1xf32> to vector<1x256xf32>
    %19 = arith.subf %15, %18 : vector<1x256xf32>
    %20 = math.exp %19 : vector<1x256xf32>
    %cst_18 = arith.constant dense<0.000000e+00> : vector<1xf32>
    %21 = vector.multi_reduction <add>, %20, %cst_18 [1] : vector<1x256xf32> to vector<1xf32>
    %22 = vector.shape_cast %21 : vector<1xf32> to vector<1x1xf32>
    %23 = tpu.reciprocal %22 : vector<1x1xf32> -> vector<1x1xf32>
    %24 = vector.broadcast %23 : vector<1x1xf32> to vector<1x256xf32>
    %25 = arith.mulf %20, %24 : vector<1x256xf32>
    %c0_19 = arith.constant 0 : index
    %c0_20 = arith.constant 0 : index
    %c0_21 = arith.constant 0 : index
    %26 = vector.load %arg1[%c0_19, %c0_20, %c0_21] : memref<1x64x256xf32, #tpu.memory_space<vmem>>, vector<1x64x256xf32>
    %27 = vector.shape_cast %26 : vector<1x64x256xf32> to vector<64x256xf32>
    %28 = vector.broadcast %25 : vector<1x256xf32> to vector<64x256xf32>
    %29 = arith.mulf %27, %28 : vector<64x256xf32>
    %cst_22 = arith.constant dense<0.000000e+00> : vector<64xf32>
    %30 = vector.multi_reduction <add>, %29, %cst_22 [1] : vector<64x256xf32> to vector<64xf32>
    %31 = vector.shape_cast %30 : vector<64xf32> to vector<64x1xf32>
    %cst_23 = arith.constant dense<0.000000e+00> : vector<4x1xf32>
    %32 = tpu.matmul %1, %31, %cst_23 {dimension_numbers = #tpu.dot_dimension_numbers<[1], [0], [0], [1], [0, 0, 1, 1], [], []>} : vector<4x64xf32>, vector<64x1xf32>, vector<4x1xf32> -> vector<4x1xf32>
    %33 = arith.addf %32, %2 : vector<4x1xf32>
    %34 = vector.shape_cast %33 : vector<4x1xf32> to vector<1x4x1xf32>
    %cst_24 = arith.constant dense<0.000000e+00> : vector<1xf32>
    %35 = vector.multi_reduction <add>, %34, %cst_24 [1, 2] : vector<1x4x1xf32> to vector<1xf32>
    %36 = vector.shape_cast %35 : vector<1xf32> to vector<1x1x1xf32>
    %37 = vector.extract %36[0, 0, 0] : f32 from vector<1x1x1xf32>
    %cst_25 = arith.constant 4.000000e+00 : f32
    %38 = arith.divf %37, %cst_25 : f32
    %39 = vector.broadcast %38 : f32 to vector<4x1xf32>
    %40 = arith.subf %33, %39 : vector<4x1xf32>
    %41 = vector.broadcast %38 : f32 to vector<4x1xf32>
    %42 = arith.subf %33, %41 : vector<4x1xf32>
    %43 = arith.mulf %40, %42 : vector<4x1xf32>
    %44 = vector.shape_cast %43 : vector<4x1xf32> to vector<1x4x1xf32>
    %cst_26 = arith.constant dense<0.000000e+00> : vector<1xf32>
    %45 = vector.multi_reduction <add>, %44, %cst_26 [1, 2] : vector<1x4x1xf32> to vector<1xf32>
    %46 = vector.shape_cast %45 : vector<1xf32> to vector<1x1x1xf32>
    %47 = vector.extract %46[0, 0, 0] : f32 from vector<1x1x1xf32>
    %cst_27 = arith.constant 4.000000e+00 : f32
    %48 = arith.divf %47, %cst_27 : f32
    %49 = vector.broadcast %38 : f32 to vector<4x1xf32>
    %50 = arith.subf %33, %49 : vector<4x1xf32>
    %cst_28 = arith.constant 9.99999974E-6 : f32
    %51 = arith.addf %48, %cst_28 : f32
    %52 = math.rsqrt %51 : f32
    %53 = vector.broadcast %52 : f32 to vector<4x1xf32>
    %54 = arith.mulf %50, %53 : vector<4x1xf32>
    %55 = arith.mulf %54, %3 : vector<4x1xf32>
    %56 = arith.addf %55, %4 : vector<4x1xf32>
    %cst_29 = arith.constant 0.000000e+00 : f32
    %57 = vector.broadcast %cst_29 : f32 to vector<4x1xf32>
    %58 = arith.maximumf %56, %57 : vector<4x1xf32>
    %cst_30 = arith.constant dense<0.000000e+00> : vector<64x1xf32>
    %59 = tpu.matmul %5, %58, %cst_30 {dimension_numbers = #tpu.dot_dimension_numbers<[1], [0], [0], [1], [0, 0, 1, 1], [], []>} : vector<64x4xf32>, vector<4x1xf32>, vector<64x1xf32> -> vector<64x1xf32>
    %60 = arith.addf %59, %6 : vector<64x1xf32>
    %c0_31 = arith.constant 0 : index
    %c0_32 = arith.constant 0 : index
    %c0_33 = arith.constant 0 : index
    %61 = vector.load %arg1[%c0_31, %c0_32, %c0_33] : memref<1x64x256xf32, #tpu.memory_space<vmem>>, vector<1x64x256xf32>
    %62 = vector.shape_cast %61 : vector<1x64x256xf32> to vector<64x256xf32>
    %63 = vector.broadcast %60 : vector<64x1xf32> to vector<64x256xf32>
    %64 = arith.addf %62, %63 : vector<64x256xf32>
    %c0_34 = arith.constant 0 : index
    %c0_35 = arith.constant 0 : index
    %c0_36 = arith.constant 0 : index
    %65 = vector.load %arg10[%c0_34, %c0_35, %c0_36] : memref<1x64x256xf32, #tpu.memory_space<vmem>>, vector<1x64x256xf32>
    %66 = vector.shape_cast %65 : vector<1x64x256xf32> to vector<64x256xf32>
    %67 = vector.shape_cast %64 : vector<64x256xf32> to vector<1x64x256xf32>
    tpu.vector_store %arg10[%c0_34, %c0_35, %c0_36], %67 {strides = array<i32>} : memref<1x64x256xf32, #tpu.memory_space<vmem>>, vector<1x64x256xf32>,
    return
  }
  func.func @transform_0(%arg0: i32) -> (i32, i32, i32) {
    %c0_i32 = arith.constant 0 : i32
    %c0_i32_0 = arith.constant 0 : i32
    %c0_i32_1 = arith.constant 0 : i32
    return %arg0, %c0_i32, %c0_i32_0 : i32, i32, i32
  }
  func.func @transform_1(%arg0: i32) -> (i32, i32) {
    %c0_i32 = arith.constant 0 : i32
    %c0_i32_0 = arith.constant 0 : i32
    %c0_i32_1 = arith.constant 0 : i32
    return %c0_i32, %c0_i32_0 : i32, i32
  }
  func.func @transform_2(%arg0: i32) -> i32 {
    %c0_i32 = arith.constant 0 : i32
    %c0_i32_0 = arith.constant 0 : i32
    return %c0_i32 : i32
  }
  func.func @transform_3(%arg0: i32) -> (i32, i32) {
    %c0_i32 = arith.constant 0 : i32
    %c0_i32_0 = arith.constant 0 : i32
    %c0_i32_1 = arith.constant 0 : i32
    return %c0_i32, %c0_i32_0 : i32, i32
  }
  func.func @transform_4(%arg0: i32) -> (i32, i32) {
    %c0_i32 = arith.constant 0 : i32
    %c0_i32_0 = arith.constant 0 : i32
    %c0_i32_1 = arith.constant 0 : i32
    return %c0_i32, %c0_i32_0 : i32, i32
  }
  func.func @transform_5(%arg0: i32) -> (i32, i32) {
    %c0_i32 = arith.constant 0 : i32
    %c0_i32_0 = arith.constant 0 : i32
    %c0_i32_1 = arith.constant 0 : i32
    return %c0_i32, %c0_i32_0 : i32, i32
  }
  func.func @transform_6(%arg0: i32) -> (i32, i32) {
    %c0_i32 = arith.constant 0 : i32
    %c0_i32_0 = arith.constant 0 : i32
    %c0_i32_1 = arith.constant 0 : i32
    return %c0_i32, %c0_i32_0 : i32, i32
  }
  func.func @transform_7(%arg0: i32) -> (i32, i32) {
    %c0_i32 = arith.constant 0 : i32
    %c0_i32_0 = arith.constant 0 : i32
    %c0_i32_1 = arith.constant 0 : i32
    return %c0_i32, %c0_i32_0 : i32, i32
  }
  func.func @transform_8(%arg0: i32) -> (i32, i32) {
    %c0_i32 = arith.constant 0 : i32
    %c0_i32_0 = arith.constant 0 : i32
    %c0_i32_1 = arith.constant 0 : i32
    return %c0_i32, %c0_i32_0 : i32, i32
  }
  func.func @transform_9(%arg0: i32) -> (i32, i32, i32) {
    %c0_i32 = arith.constant 0 : i32
    %c0_i32_0 = arith.constant 0 : i32
    %c0_i32_1 = arith.constant 0 : i32
    return %arg0, %c0_i32, %c0_i32_0 : i32, i32, i32
  }
}

</mosaic_0001>

<bundles_post_ra>
// kernel: tpu_custom_call.1
= control target key start
LH: loop header
LB: loop body
LE: loop exit
PB: predicated region body
PF: predicated region fallthrough
CT: control target
= control target key end

     0   :  { %s1640_s0 = inlined_call_operand.hbm [shape: f32[2,64,256], index: 0, kind: input, shape index: {}]   ;;  %s1641_s1 = inlined_call_operand.vmem [shape: f32[64,1], index: 1, kind: input, shape index: {}]   ;;  %s1642_s2 = inlined_call_operand.<no memory space> [shape: f32[1], index: 2, kind: input, shape index: {}]   ;;  %s1643_s3 = inlined_call_operand.vmem [shape: f32[4,64], index: 3, kind: input, shape index: {}]   ;;  %s1644_s4 = inlined_call_operand.vmem [shape: f32[4,1], index: 4, kind: input, shape index: {}]   ;;  %s1645_s5 = inlined_call_operand.vmem [shape: f32[4,1], index: 5, kind: input, shape index: {}]   ;;  %s1646_s6 = inlined_call_operand.vmem [shape: f32[4,1], index: 6, kind: input, shape index: {}]   ;;  %s1647_s7 = inlined_call_operand.vmem [shape: f32[64,4], index: 7, kind: input, shape index: {}]   ;;  %s1648_s8 = inlined_call_operand.vmem [shape: f32[64,1], index: 8, kind: input, shape index: {}]   ;;  %s1649_s9 = inlined_call_operand.hbm [shape: f32[2,64,256], index: 9, kind: output, shape index: {}]  }
   0x1   :  { %14 = sst [smem:[#allocation2]] %s1642_s2 }
   0x2   :  { %15 = vsyncpa [#allocation4], 0 }
   0x3   :  { %17 = vsyncpa [#allocation4 + $0x1], 0 }
   0x4   :  { %18 = vsyncpa [#allocation5], 0 }
   0x5   :  { %20 = vsyncpa [#allocation5 + $0x1], 0  ;;  %s1263_s11 = smov 0   ;;  %s1265_s12 = smov 0  }
   0x6   :  { %s1267_s13 = smov 0   ;;  %s1269_s14 = smov 0  }
   0x7 LB: > { %s1284_s2 = sadd.s32 4294967295, %s1198_s14   ;;  %s943_s15 = sadd.s32 4294967294, %s1198_s14   ;;  %s1198_s14 = sphi %s1269_s14, %s1662_s14   ;;  %s1194_s13 = sphi %s1267_s13, %s1661_s13   ;;  %s1190_s12 = sphi %s1265_s12, %s1660_s12   ;;  %s1186_s11 = sphi %s1263_s11, %s1659_s11  }
   0x8   : > { %s1288_s16 = sadd.s32 1, %s1198_s14   ;;  %s33_s17 = sadd.s32 1, %s1194_s13 }
   0x9   : > { %s30_s18 = ssub.s32 %s1198_s14, %s1288_s16  ;;  %p40_p0 = scmp.ne.s32.totalorder %s1194_s13, %s1190_s12 }
   0xa   : > { %p31_p1 = scmp.eq.s32.totalorder %s30_s18, 0  ;;  %p41_p2 = scmp.eq.s32.totalorder %s1198_s14, 0 }
   0xb   : > { %p46_p3 = scmp.ne.s32.totalorder %s1190_s12, %s1186_s11  ;;  %p47_p4 = scmp.eq.s32.totalorder %s1284_s2, 0 }
   0xc   : > { %s1300_s19 = scalar_select %p31_p1, %s1194_s13, %s33_s17  }
   0xd   : > { %p1302_p5 = por %p41_p2, %p40_p0  ;;  %p1306_p6 = por %p47_p4, %p46_p3 }
   0xe   : > { %p238_p7 = scmp.eq.s32.totalorder %s1284_s2, 1  ;;  %p244_p8 = scmp.eq.s32.totalorder %s943_s15, 1 }
   0xf   : > { %p1050_p10 = scmp.lt.s32.totalorder %s1198_s14, 2  ;;  %s288_s24 = sand.u32 1, %s1194_s13  }
  0x10   : > { %p1313_p11 = por %p238_p7, %p40_p0  ;;  %p1317_p12 = por %p244_p8, %p46_p3 }
  0x11   : > { %s967_s25 = sshll.u32 %s1198_s14, 11  ;;  %s946_s26 = sshll.u32 %s288_s24, 7 }
  0x12   : > { %s1653_s22 = scalar_select %p1313_p11, 1, 0 }
  0x13   : > { %s1654_s23 = scalar_select %p1317_p12, 1, 0 }
  0x14   : > { %s1326_s29 = scalar_lea.hbm %s1640_s0, %s967_s25  ;;  %s292_s30 = scalar_lea.vmem [#allocation3], %s946_s26 }
  0x15   : > { %s299_s10 = sshll.u32 %s292_s30, 4  ;;  %p1330_p13 = pnand %p1050_p10, %p1302_p5  ;;  %s1334_s10 = int_to_ptr.vmem [resolvable:$true] %s299_s10 }
  0x16   : > { %s1336_s17 = scalar_lea.sflag [#allocation4], %s288_s24  ;;  %s1102_s18 = scalar_lea.hbm %s1326_s29, 2048 }
  0x17   : > { %p1103_p0 = scmp.ne.s32.totalorder %s1326_s29, %s1102_s18  ;;  %p1104_p1 = pneg %p1330_p13 }
  0x18   : > { %s1107_s26 = scalar_lea.hbm %s1640_s0, 4096  ;;  %p1108_p4 = scmp.lt.u32.totalorder %s1326_s29, %s1640_s0 }
  0x19   : > { %p1105_p2 = pnand %p1104_p1, %p1103_p0  ;;  %p1109_p5 = scmp.lt.u32.totalorder %s1107_s26, %s1102_s18 }
  0x1a   : > { %p1111_p8 = scmp.lt.u32.totalorder %s1102_s18, %s1326_s29 }
  0x1b   : > { %p1106_p3 = pneg %p1105_p2  ;;  %p1110_p7 = por %p1109_p5, %p1108_p4 }
  0x1d   : > { %p1112_p10 = por %p1111_p8, %p1110_p7 }
  0x1f   : > { %p1113_p9 = pnand %p1112_p10, %p1106_p3 }
  0x21   : > { %1116 = shalt.err (!%p1113_p9)
}
  0x22   : > { %s1117_s24 = scalar_lea.vmem %s1334_s10, 2048  ;;  %s1200_s30 = smov [#allocation3]  }
  0x23   : > { %p1118_p0 = scmp.ne.s32.totalorder %s1334_s10, %s1117_s24  ;;  %s1122_s25 = sshll.u32 %s1200_s30, 4  ;;  %s1123_s25 = int_to_ptr.vmem [resolvable:$false] %s1122_s25 }
  0x24   : > { %s1124_s20 = scalar_lea.vmem %s1123_s25, 4096  ;;  %p1125_p11 = scmp.lt.s32.totalorder %s1334_s10, %s1123_s25 }
  0x25   : > { %p1120_p2 = pnand %p1118_p0, %p1104_p1  ;;  %p1126_p4 = scmp.lt.s32.totalorder %s1124_s20, %s1117_s24 }
  0x27   : > { %p1121_p12 = pneg %p1120_p2  ;;  %p1127_p5 = por %p1126_p4, %p1125_p11 }
  0x29   : > { %p1128_p7 = pnand %p1127_p5, %p1121_p12 }
  0x2b   : > { %1131 = shalt.err (!%p1128_p7)
}
  0x2c   : > { %s1201_s18 = smov 256   ;;  %s1202_s26 = smov 16  }
  0x2d   : > { %1045 = dma.hbm_to_vmem [thread:$0]  (!%p1330_p13), %s1326_s29, 2048, %s1334_s10, %s1336_s17, %s1201_s18, %s1201_s18, %s1202_s26  }
  0x2e   : > { %p949_p9 = scmp.ge.s32.totalorder %s1198_s14, 1  ;;  %p307_p1 = scmp.lt.s32.totalorder %s1198_s14, 3 }
  0x30   : > { %p308_p3 = pnand %p949_p9, %p307_p1 }
  0x31   : > { %s1367_s27 = sand.u32 (!%p308_p3), 1, %s1190_s12  }
  0x32   : > { %311 = sbr.rel (%p308_p3) target bundleno = 1790 (0x6fe), region = 56  ;;  %s950_s28 = sshll.u32 (!%p308_p3), %s1367_s27, 7 }
  0x33   : > { %s314_s24 = scalar_lea.sflag (!%p308_p3), [#allocation4], %s1367_s27  ;;  %s1373_s30 = scalar_lea.vmem (!%p308_p3), [#allocation3], %s950_s28 }
  0x39   : > { %1177 = dma.done.wait (%p1306_p6), %s314_s24, 2048  }
  0x3a   : > { %1179 = vsyncadd (%p1306_p6), %s314_s24, 4294965248  ;;  %v1203_v0 = vmov 0   ;;  %v354_v1 = vld [vmem:[%s1641_s1 + $0x10] sm:$0xff]  ;;  %v352_v2 = vld [vmem:[%s1641_s1] sm:$0xff]  ;;  %s380_s21 = sld [smem:[#allocation2]]  ;;  %vm1205_vm0 = vmmov 0  }
  0x3b   : > { %1093 = vset.pattern.permute.xlu1 %v1203_v0  ;;  %1092 = vset.pattern.permute.xlu0 %v1203_v0  ;;  %v355_v3 = vld [vmem:[%s1641_s1 + $0x18] sm:$0xff]  ;;  %v353_v4 = vld [vmem:[%s1641_s1 + $0x8] sm:$0xff]  ;;  %v356_v6 = vld [vmem:[%s1641_s1 + $0x20] sm:$0xff]  ;;  %vm537_vm1 = vcmask 523264   ;;  %vm611_vm2 = vcmask 3072   ;;  %vm650_vm3 = vcmask 31744  }
  0x3c   : > { %409 = vperm.xlu1 %1093, %v354_v1   ;;  %399 = vperm.xlu0 %1092, %v352_v2   ;;  %v357_v5 = vld [vmem:[%s1641_s1 + $0x28] sm:$0xff]  ;;  %v359_v7 = vld [vmem:[%s1641_s1 + $0x38] sm:$0xff]  ;;  %v358_v8 = vld [vmem:[%s1641_s1 + $0x30] sm:$0xff]  ;;  %vm675_vm4 = vcmask 1043456   ;;  %s1559_s26 = scalar_lea.vmem [#allocation6], %s950_s28  ;;  %s968_s28 = sshll.u32 %s1284_s2, 11 }
  0x3d   : > { %v1404_v11 = vld [vmem:[%s1373_s30] sm:$0xff]  ;;  %v1407_v12 = vld [vmem:[%s1373_s30 + $0x8] sm:$0xff]  ;;  %v1410_v13 = vld [vmem:[%s1373_s30 + $0x10] sm:$0xff]  ;;  %s870_s24 = sshll.u32 %s1559_s26, 4  ;;  %s1590_s15 = scalar_lea.hbm %s1649_s9, %s968_s28  ;;  %s1592_s24 = int_to_ptr.vmem [resolvable:$true] %s870_s24 }
  0x3e   : > { %v1413_v14 = vld [vmem:[%s1373_s30 + $0x18] sm:$0xff]  ;;  %v1416_v15 = vld [vmem:[%s1373_s30 + $0x20] sm:$0xff]  ;;  %v1419_v16 = vld [vmem:[%s1373_s30 + $0x28] sm:$0xff]  ;;  %s857_s2 = scalar_lea.sflag [#allocation5], %s1367_s27  ;;  %s1132_s17 = scalar_lea.vmem %s1592_s24, 2048 }
  0x3f   : > { %v1426_v23 = vld [vmem:[%s1373_s30 + $0x30] sm:$0xff]  ;;  %v1429_v24 = vld [vmem:[%s1373_s30 + $0x38] sm:$0xff]  ;;  %v1434_v30 = vld [vmem:[%s1373_s30 + $0x40] sm:$0xff]  ;;  %p1133_p6 = scmp.ne.s32.totalorder %s1592_s24, %s1132_s17  ;;  %p1656_p11 = scmp.ne.s32.totalorder %s1653_s22, 0 }
  0x40   : > { %414 = vperm.xlu1 %1093, %v355_v3   ;;  %404 = vperm.xlu0 %1092, %v353_v4   ;;  %v1437_v31 = vld [vmem:[%s1373_s30 + $0x48] sm:$0xff]  ;;  %v1442_v37 = vld [vmem:[%s1373_s30 + $0x50] sm:$0xff]  ;;  %v1445_v38 = vld [vmem:[%s1373_s30 + $0x58] sm:$0xff] }
  0x41   : > { %v1450_v43 = vld [vmem:[%s1373_s30 + $0x60] sm:$0xff]  ;;  %v1453_v44 = vld [vmem:[%s1373_s30 + $0x68] sm:$0xff]  ;;  %v1458_v50 = vld [vmem:[%s1373_s30 + $0x70] sm:$0xff]  ;;  %p1134_p12 = pnand %p1133_p6, %p1656_p11 }
  0x42   : > { %v1461_v51 = vld [vmem:[%s1373_s30 + $0x78] sm:$0xff] }
  0x43   : > { %p1135_p13 = pneg %p1134_p12 }
  0x44   : > { %424 = vperm.xlu1 %1093, %v357_v5   ;;  %419 = vperm.xlu0 %1092, %v356_v6  }
  0x48   : > { %434 = vperm.xlu1 %1093, %v359_v7   ;;  %429 = vperm.xlu0 %1092, %v358_v8  }
  0xbb   : > { %v410_v9 = vpop.permute.xlu1 %409  ;;  %v400_v10 = vpop.permute.xlu0 %399 }
  0xbc   : > { %v437_v19 = vmul.f32 %v400_v10, %v1404_v11  ;;  %v438_v20 = vmul.f32 %v400_v10, %v1407_v12  ;;  %v441_v25 = vmul.f32 %v410_v9, %v1416_v15  ;;  %v442_v26 = vmul.f32 %v410_v9, %v1419_v16 }
  0xbd   : > { %v479_v9 = vstv %s380_s21 }
  0xbf   : > { %v415_v17 = vpop.permute.xlu1 %414  ;;  %v405_v18 = vpop.permute.xlu0 %404 }
  0xc0   : > { %v439_v21 = vmul.f32 %v405_v18, %v1410_v13  ;;  %v440_v22 = vmul.f32 %v405_v18, %v1413_v14  ;;  %v443_v33 = vmul.f32 %v415_v17, %v1426_v23  ;;  %v444_v34 = vmul.f32 %v415_v17, %v1429_v24 }
  0xc2   : > { %v453_v27 = vadd.f32 %v439_v21, %v437_v19  ;;  %v466_v28 = vadd.f32 %v440_v22, %v438_v20 }
  0xc3   : > { %v425_v29 = vpop.permute.xlu1 %424  ;;  %v420_v32 = vpop.permute.xlu0 %419 }
  0xc4   : > { %v454_v35 = vadd.f32 %v453_v27, %v441_v25  ;;  %v467_v36 = vadd.f32 %v466_v28, %v442_v26  ;;  %v445_v41 = vmul.f32 %v420_v32, %v1434_v30  ;;  %v446_v42 = vmul.f32 %v420_v32, %v1437_v31 }
  0xc5   : > { %v447_v46 = vmul.f32 %v425_v29, %v1442_v37  ;;  %v448_v47 = vmul.f32 %v425_v29, %v1445_v38 }
  0xc6   : > { %v455_v39 = vadd.f32 %v454_v35, %v443_v33  ;;  %v468_v40 = vadd.f32 %v467_v36, %v444_v34 }
  0xc7   : > { %v430_v45 = vpop.permute.xlu0 %429  ;;  %v435_v52 = vpop.permute.xlu1 %434 }
  0xc8   : > { %v456_v48 = vadd.f32 %v455_v39, %v445_v41  ;;  %v469_v49 = vadd.f32 %v468_v40, %v446_v42  ;;  %v449_v55 = vmul.f32 %v430_v45, %v1450_v43  ;;  %v450_v56 = vmul.f32 %v430_v45, %v1453_v44 }
  0xc9   : > { %v451_v57 = vmul.f32 %v435_v52, %v1458_v50  ;;  %v452_v58 = vmul.f32 %v435_v52, %v1461_v51 }
  0xca   : > { %v457_v53 = vadd.f32 %v456_v48, %v447_v46  ;;  %v470_v54 = vadd.f32 %v469_v49, %v448_v47 }
  0xcc   : > { %v458_v59 = vadd.f32 %v457_v53, %v449_v55  ;;  %v471_v60 = vadd.f32 %v470_v54, %v450_v56 }
  0xce   : > { %v459_v61 = vadd.f32 %v458_v59, %v451_v57  ;;  %v472_v62 = vadd.f32 %v471_v60, %v452_v58 }
  0xd0   : > { %v460_v63 = vrot.slane %v459_v61, 4  ;;  %v473_v0 = vrot.slane %v472_v62, 4 }
  0xd2   : > { %v461_v1 = vadd.f32 %v460_v63, %v459_v61  ;;  %v474_v2 = vadd.f32 %v473_v0, %v472_v62 }
  0xd4   : > { %v462_v3 = vrot.slane %v461_v1, 2  ;;  %v475_v4 = vrot.slane %v474_v2, 2 }
  0xd6   : > { %v463_v5 = vadd.f32 %v462_v3, %v461_v1  ;;  %v476_v6 = vadd.f32 %v475_v4, %v474_v2  ;;  %v1204_v3 = vmov 0.0|0.0   ;;  %v1206_v4 = vmov 0.0  }
  0xd7   : > { %1020 = vmatprep.subr.bf16.mxu0 %v1204_v3  ;;  %1003 = vmatprep.mubr.msk.f32.mxu0 %vm1205_vm0, %v1206_v4  ;;  %v366_v4 = vld [vmem:[%s1647_s7 + $0x10] sm:$0xff] }
  0xd8   : > { %v464_v7 = vrot.slane %v463_v5, 1  ;;  %v477_v8 = vrot.slane %v476_v6, 1 }
  0xda   : > { %v465_v10 = vadd.f32 %v464_v7, %v463_v5  ;;  %v478_v17 = vadd.f32 %v477_v8, %v476_v6 }
  0xdc   : > { %v480_v18 = vadd.f32 %v479_v9, %v465_v10  ;;  %v481_v19 = vadd.f32 %v479_v9, %v478_v17 }
  0xde   : > { %v482_v20 = vmax.f32 %v480_v18, %v481_v19 }
  0xe0   : > { %483 = vmax.xlane.f32.xlu0 %v482_v20 }
 0x16d   : > { %v484_v21 = vpop.xlane.xlu0 %483 }
 0x16e   : > { %v485_v22 = vsub.f32 %v480_v18, %v484_v21  ;;  %v486_v25 = vsub.f32 %v481_v19, %v484_v21 }
 0x170   : > { %v487_v26 = vmul.f32 1.442695, %v485_v22  ;;  %v489_v27 = vmul.f32 1.442695, %v486_v25  ;;  %v360_v25 = vld [vmem:[%s1643_s3] sm:$0xf] }
 0x172   : > { %1094 = vpow2.f32 %v487_v26  ;;  %v361_v26 = vld [vmem:[%s1644_s4] sm:$0xf] }
 0x173   : > { %1096 = vpow2.f32 %v489_v27 }
 0x17c   : > { %v1095_v28 = vpop.eup %1094 }
 0x17d   : > { %v1097_v29 = vpop.eup %1096 }
 0x17e   : > { %v491_v32 = vadd.f32 %v1097_v29, %v1095_v28 }
 0x180   : > { %492 = vadd.xlane.f32.xlu1 %v491_v32 }
 0x20d   : > { %v493_v33 = vpop.xlane.xlu1 %492 }
 0x20e   : > { %1098 = vrcp.f32 %v493_v33 }
 0x218   : > { %v1099_v34 = vpop.eup %1098 }
 0x219   : > { %v495_v35 = vmul.f32 %v1099_v34, %v1095_v28  ;;  %v496_v36 = vmul.f32 %v1099_v34, %v1097_v29 }
 0x21b   : > { %v501_v39 = vmul.f32 %v495_v35, %v1416_v15  ;;  %v502_v40 = vmul.f32 %v496_v36, %v1419_v16  ;;  %v497_v41 = vmul.f32 %v495_v35, %v1404_v11  ;;  %v498_v42 = vmul.f32 %v496_v36, %v1407_v12 }
 0x21c   : > { %v505_v45 = vmul.f32 %v495_v35, %v1434_v30  ;;  %v506_v46 = vmul.f32 %v496_v36, %v1437_v31  ;;  %v499_v49 = vmul.f32 %v495_v35, %v1410_v13  ;;  %v500_v52 = vmul.f32 %v496_v36, %v1413_v14 }
 0x21d   : > { %v519_v47 = vadd.f32 %v502_v40, %v501_v39  ;;  %v513_v48 = vadd.f32 %v498_v42, %v497_v41  ;;  %v509_v53 = vmul.f32 %v495_v35, %v1450_v43  ;;  %v510_v54 = vmul.f32 %v496_v36, %v1453_v44 }
 0x21e   : > { %v525_v55 = vadd.f32 %v506_v46, %v505_v45  ;;  %v516_v56 = vadd.f32 %v500_v52, %v499_v49  ;;  %v503_v57 = vmul.f32 %v495_v35, %v1426_v23  ;;  %v504_v58 = vmul.f32 %v496_v36, %v1429_v24 }
 0x21f   : > { %520 = vadd.xlane.f32.xlu1 %v519_v47  ;;  %514 = vadd.xlane.f32.xlu0 %v513_v48  ;;  %v531_v59 = vadd.f32 %v510_v54, %v509_v53  ;;  %v507_v61 = vmul.f32 %v495_v35, %v1442_v37  ;;  %v508_v62 = vmul.f32 %v496_v36, %v1445_v38 }
 0x220   : > { %v522_v60 = vadd.f32 %v504_v58, %v503_v57  ;;  %v511_v0 = vmul.f32 %v495_v35, %v1458_v50  ;;  %v512_v1 = vmul.f32 %v496_v36, %v1461_v51  ;;  %v364_v57 = vld [vmem:[%s1647_s7] sm:$0xff] }
 0x221   : > { %v528_v63 = vadd.f32 %v508_v62, %v507_v61  ;;  %1008 = vmatprep.mubr.msk.f32.mxu1 %vm650_vm3, %v364_v57 }
 0x222   : > { %v534_v2 = vadd.f32 %v512_v1, %v511_v0 }
 0x223   : > { %526 = vadd.xlane.f32.xlu1 %v525_v55  ;;  %517 = vadd.xlane.f32.xlu0 %v516_v56 }
 0x227   : > { %532 = vadd.xlane.f32.xlu1 %v531_v59  ;;  %523 = vadd.xlane.f32.xlu0 %v522_v60  ;;  %v362_v60 = vld [vmem:[%s1645_s5] sm:$0xf] }
 0x22b   : > { %529 = vadd.xlane.f32.xlu0 %v528_v63  ;;  %v363_v63 = vld [vmem:[%s1646_s6] sm:$0xf] }
 0x22f   : > { %535 = vadd.xlane.f32.xlu0 %v534_v2 }
 0x2ac   : > { %v515_v5 = vpop.xlane.xlu0 %514  ;;  %v521_v6 = vpop.xlane.xlu1 %520 }
 0x2b0   : > { %v518_v7 = vpop.xlane.xlu0 %517  ;;  %v527_v17 = vpop.xlane.xlu1 %526 }
 0x2b1   : > { %v1021_v8 = vpack.c.bf16 %v518_v7, %v515_v5  ;;  %v367_v5 = vld [vmem:[%s1647_s7 + $0x18] sm:$0xff]  ;;  %v369_v7 = vld [vmem:[%s1647_s7 + $0x28] sm:$0xff] }
 0x2b3   : > { %1022 = vmatpush3.bf16.msra.mxu0 %v1021_v8  ;;  %v370_v8 = vld [vmem:[%s1647_s7 + $0x30] sm:$0xff] }
 0x2b4   : > { %v524_v9 = vpop.xlane.xlu0 %523  ;;  %1023 = vmatprep.subr.bf16.mxu0 %v1204_v3  ;;  %v533_v20 = vpop.xlane.xlu1 %532 }
 0x2b5   : > { %v1024_v10 = vpack.c.bf16 %v524_v9, %v521_v6  ;;  %v368_v6 = vld [vmem:[%s1647_s7 + $0x20] sm:$0xff]  ;;  %v371_v9 = vld [vmem:[%s1647_s7 + $0x38] sm:$0xff] }
 0x2b7   : > { %1025 = vmatpush3.bf16.msra.mxu0 %v1024_v10  ;;  %v373_v10 = vld [vmem:[%s1648_s8 + $0x8] sm:$0xff] }
 0x2b8   : > { %v530_v18 = vpop.xlane.xlu0 %529  ;;  %1026 = vmatprep.subr.bf16.mxu0 %v1204_v3 }
 0x2b9   : > { %v1027_v19 = vpack.c.bf16 %v530_v18, %v527_v17  ;;  %v372_v17 = vld [vmem:[%s1648_s8] sm:$0xff] }
 0x2bb   : > { %1028 = vmatpush3.bf16.msra.mxu0 %v1027_v19 }
 0x2bc   : > { %v536_v21 = vpop.xlane.xlu0 %535  ;;  %1029 = vmatprep.subr.bf16.mxu0 %v1204_v3  ;;  %v365_v3 = vld [vmem:[%s1647_s7 + $0x8] sm:$0xff] }
 0x2bd   : > { %v1030_v22 = vpack.c.bf16 %v536_v21, %v533_v20 }
 0x2bf   : > { %1031 = vmatpush3.bf16.msra.mxu0 %v1030_v22  ;;  %v375_v22 = vld [vmem:[%s1648_s8 + $0x18] sm:$0xff] }
 0x2c2   : > { %1004 = vmatmul.mubr.msk.f32.vlgmr.msra.gmra.mrb[0].mxu0 %vm537_vm1, %v360_v25 }
 0x395   : > { %v607_v27 = vpop.f32.mrb[0].mxu0 }
 0x396   : > { %v608_v28 = vadd.f32 %v607_v27, %v361_v26  ;;  %v1005_v29 = vpop.f32.mrb[1].mxu0 }
 0x397   : > { %v376_v29 = vld [vmem:[%s1648_s8 + $0x20] sm:$0xff] }
 0x398   : > { %v612_v32 = vsel %vm611_vm2, %v608_v28, 0.0 }
 0x399   : > { %613 = vadd.xlane.f32.xlu1 %v612_v32 }
 0x426   : > { %v614_v33 = vpop.xlane.xlu1 %613 }
 0x427   : > { %v615_v34 = vrot.slane %v614_v33, 4 }
 0x429   : > { %v616_v35 = vadd.f32 %v615_v34, %v614_v33  ;;  %v377_v33 = vld [vmem:[%s1648_s8 + $0x28] sm:$0xff] }
 0x42b   : > { %v617_v36 = vrot.slane %v616_v35, 2 }
 0x42d   : > { %v618_v39 = vadd.f32 %v617_v36, %v616_v35 }
 0x42f   : > { %v619_v40 = vrot.slane %v618_v39, 1 }
 0x431   : > { %v620_v41 = vadd.f32 %v619_v40, %v618_v39  ;;  %v378_v39 = vld [vmem:[%s1648_s8 + $0x30] sm:$0xff] }
 0x433   : > { %1032 = vpush %v620_v41 }
 0x464   : > { %s1033_s29 = spop %1032 }
 0x465   : > { %s624_s10 = smul.f32 0.25, %s1033_s29 }
 0x467   : > { %v625_v42 = vstv %s624_s10 }
 0x468   : > { %v626_v45 = vsub.f32 %v608_v28, %v625_v42  ;;  %v374_v28 = vld [vmem:[%s1648_s8 + $0x10] sm:$0xff]  ;;  %v379_v42 = vld [vmem:[%s1648_s8 + $0x38] sm:$0xff] }
 0x46a   : > { %v627_v46 = vmul.f32 %v626_v45, %v626_v45 }
 0x46c   : > { %v628_v47 = vsel %vm611_vm2, %v627_v46, 0.0 }
 0x46d   : > { %629 = vadd.xlane.f32.xlu0 %v628_v47 }
 0x4fa   : > { %v630_v48 = vpop.xlane.xlu0 %629 }
 0x4fb   : > { %v631_v49 = vrot.slane %v630_v48, 4 }
 0x4fd   : > { %v632_v52 = vadd.f32 %v631_v49, %v630_v48 }
 0x4ff   : > { %v633_v53 = vrot.slane %v632_v52, 2 }
 0x501   : > { %v634_v54 = vadd.f32 %v633_v53, %v632_v52 }
 0x503   : > { %v635_v55 = vrot.slane %v634_v54, 1 }
 0x505   : > { %v636_v56 = vadd.f32 %v635_v55, %v634_v54 }
 0x507   : > { %1034 = vpush %v636_v56 }
 0x538   : > { %s1035_s25 = spop %1034 }
 0x539   : > { %s640_s20 = smul.f32 0.25, %s1035_s25  ;;  %s1207_s25 = smov [#allocation6]  }
 0x53b   : > { %s641_s21 = sadd.f32 1e-05, %s640_s20  ;;  %s1136_s20 = sshll.u32 %s1207_s25, 4  ;;  %s1137_s20 = int_to_ptr.vmem [resolvable:$false] %s1136_s20 }
 0x53c   : > { %p1139_p8 = scmp.lt.s32.totalorder %s1592_s24, %s1137_s20 }
 0x53d   : > { %v642_v58 = vstv %s641_s21  ;;  %s1138_s21 = scalar_lea.vmem %s1137_s20, 4096 }
 0x53e   : > { %1100 = vrsqrt.f32 %v642_v58  ;;  %p1140_p10 = scmp.lt.s32.totalorder %s1138_s21, %s1132_s17 }
 0x540   : > { %p1141_p0 = por %p1140_p10, %p1139_p8 }
 0x542   : > { %p1142_p2 = pnand %p1141_p0, %p1135_p13 }
 0x548   : > { %v1101_v59 = vpop.eup %1100 }
 0x549   : > { %1036 = vpush %v1101_v59 }
 0x57a   : > { %s1037_s30 = spop %1036 }
 0x57b   : > { %v645_v61 = vstv %s1037_s30 }
 0x57c   : > { %v646_v62 = vmul.f32 %v645_v61, %v626_v45 }
 0x57e   : > { %v647_v0 = vmul.f32 %v646_v62, %v362_v60 }
 0x580   : > { %v648_v1 = vadd.f32 %v647_v0, %v363_v63 }
 0x582   : > { %v649_v2 = vmax.f32 %v648_v1, 0.0 }
 0x584   : > { %1006 = vmatprep.subr.msk.mxu1 %vm675_vm4, %v649_v2 }
 0x585   : > { %1007 = vmatpush3.msk.msra.mxu1 %vm675_vm4, %v649_v2 }
 0x586   : > { %1009 = vmatmul.mubr.msk.f32.vlgmr.msra.gmra.mrb[0].mxu1 %vm650_vm3, %v365_v3 }
 0x587   : > { %1011 = vmatprep.mubr.msk.f32.mxu1 %vm650_vm3, %v366_v4 }
 0x58a   : > { %1012 = vmatmul.mubr.msk.f32.gmra.mrb[2].mxu1 %vm650_vm3, %v367_v5 }
 0x58b   : > { %1014 = vmatprep.mubr.msk.f32.mxu1 %vm650_vm3, %v368_v6 }
 0x58e   : > { %1015 = vmatmul.mubr.msk.f32.gmra.mrb[4].mxu1 %vm650_vm3, %v369_v7 }
 0x58f   : > { %1017 = vmatprep.mubr.msk.f32.mxu1 %vm650_vm3, %v370_v8 }
 0x592   : > { %1018 = vmatmul.mubr.msk.f32.gmra.mrb[6].mxu1 %vm650_vm3, %v371_v9 }
 0x659   : > { %v1010_v18 = vpop.f32.mrb[0].mxu1 }
 0x65a   : > { %v751_v19 = vadd.f32 %v1010_v18, %v373_v10  ;;  %v745_v20 = vpop.f32.mrb[1].mxu1 }
 0x65b   : > { %v746_v21 = vadd.f32 %v745_v20, %v372_v17 }
 0x65c   : > { %791 = vperm.xlu0 %1092, %v751_v19  }
 0x65d   : > { %v1013_v25 = vpop.f32.mrb[2].mxu1  ;;  %786 = vperm.xlu1 %1093, %v746_v21  }
 0x65e   : > { %v761_v26 = vadd.f32 %v1013_v25, %v375_v22  ;;  %v755_v27 = vpop.f32.mrb[3].mxu1 }
 0x65f   : > { %v756_v35 = vadd.f32 %v755_v27, %v374_v28 }
 0x661   : > { %v1016_v32 = vpop.f32.mrb[4].mxu1  ;;  %801 = vperm.xlu1 %1093, %v761_v26  }
 0x662   : > { %v765_v34 = vpop.f32.mrb[5].mxu1  ;;  %v771_v40 = vadd.f32 %v1016_v32, %v377_v33 }
 0x663   : > { %v766_v36 = vadd.f32 %v765_v34, %v376_v29 }
 0x665   : > { %v1019_v41 = vpop.f32.mrb[6].mxu1  ;;  %806 = vperm.xlu0 %1092, %v766_v36   ;;  %796 = vperm.xlu1 %1093, %v756_v35  }
 0x666   : > { %v775_v45 = vpop.f32.mrb[7].mxu1  ;;  %v781_v47 = vadd.f32 %v1019_v41, %v379_v42 }
 0x667   : > { %v776_v46 = vadd.f32 %v775_v45, %v378_v39 }
 0x669   : > { %816 = vperm.xlu0 %1092, %v776_v46   ;;  %811 = vperm.xlu1 %1093, %v771_v40  }
 0x66d   : > { %821 = vperm.xlu1 %1093, %v781_v47  }
 0x6db   : > { %v792_v48 = vpop.permute.xlu0 %791 }
 0x6dc   : > { %v826_v49 = vadd.f32 %v792_v48, %v1410_v13  ;;  %v827_v52 = vadd.f32 %v792_v48, %v1413_v14  ;;  %v787_v53 = vpop.permute.xlu1 %786 }
 0x6dd   : > { %v824_v54 = vadd.f32 %v787_v53, %v1404_v11  ;;  %v825_v55 = vadd.f32 %v787_v53, %v1407_v12 }
 0x6de   : > { %842 = vst [vmem:[%s1559_s26 + $0x10] sm:$0xff] %v826_v49  ;;  %843 = vst [vmem:[%s1559_s26 + $0x18] sm:$0xff] %v827_v52 }
 0x6df   : > { %840 = vst [vmem:[%s1559_s26] sm:$0xff] %v824_v54  ;;  %841 = vst [vmem:[%s1559_s26 + $0x8] sm:$0xff] %v825_v55 }
 0x6e0   : > { %v802_v11 = vpop.permute.xlu1 %801 }
 0x6e1   : > { %v830_v12 = vadd.f32 %v802_v11, %v1426_v23  ;;  %v831_v13 = vadd.f32 %v802_v11, %v1429_v24 }
 0x6e3   : > { %846 = vst [vmem:[%s1559_s26 + $0x30] sm:$0xff] %v830_v12  ;;  %847 = vst [vmem:[%s1559_s26 + $0x38] sm:$0xff] %v831_v13 }
 0x6e4   : > { %v807_v14 = vpop.permute.xlu0 %806  ;;  %v797_v56 = vpop.permute.xlu1 %796 }
 0x6e5   : > { %v832_v57 = vadd.f32 %v807_v14, %v1434_v30  ;;  %v833_v58 = vadd.f32 %v807_v14, %v1437_v31  ;;  %v828_v59 = vadd.f32 %v797_v56, %v1416_v15  ;;  %v829_v60 = vadd.f32 %v797_v56, %v1419_v16 }
 0x6e7   : > { %848 = vst [vmem:[%s1559_s26 + $0x40] sm:$0xff] %v832_v57  ;;  %849 = vst [vmem:[%s1559_s26 + $0x48] sm:$0xff] %v833_v58 }
 0x6e8   : > { %844 = vst [vmem:[%s1559_s26 + $0x20] sm:$0xff] %v828_v59  ;;  %845 = vst [vmem:[%s1559_s26 + $0x28] sm:$0xff] %v829_v60  ;;  %v817_v23 = vpop.permute.xlu0 %816  ;;  %v812_v24 = vpop.permute.xlu1 %811 }
 0x6e9   : > { %v836_v61 = vadd.f32 %v817_v23, %v1450_v43  ;;  %v837_v30 = vadd.f32 %v817_v23, %v1453_v44  ;;  %v834_v31 = vadd.f32 %v812_v24, %v1442_v37  ;;  %v835_v15 = vadd.f32 %v812_v24, %v1445_v38 }
 0x6eb   : > { %852 = vst [vmem:[%s1559_s26 + $0x60] sm:$0xff] %v836_v61  ;;  %853 = vst [vmem:[%s1559_s26 + $0x68] sm:$0xff] %v837_v30 }
 0x6ec   : > { %850 = vst [vmem:[%s1559_s26 + $0x50] sm:$0xff] %v834_v31  ;;  %851 = vst [vmem:[%s1559_s26 + $0x58] sm:$0xff] %v835_v15  ;;  %v822_v16 = vpop.permute.xlu1 %821 }
 0x6ed   : > { %v838_v37 = vadd.f32 %v822_v16, %v1458_v50  ;;  %v839_v38 = vadd.f32 %v822_v16, %v1461_v51 }
 0x6ef   : > { %854 = vst [vmem:[%s1559_s26 + $0x70] sm:$0xff] %v838_v37  ;;  %855 = vst [vmem:[%s1559_s26 + $0x78] sm:$0xff] %v839_v38 }
 0x6f0   : > { %1145 = shalt.err (!%p1142_p2)
}
 0x6f1   : > { %s1146_s30 = scalar_lea.hbm %s1590_s15, 2048  ;;  %s1150_s28 = scalar_lea.hbm %s1649_s9, 4096 }
 0x6f2   : > { %p1147_p4 = scmp.ne.s32.totalorder %s1590_s15, %s1146_s30  ;;  %p1151_p9 = scmp.lt.u32.totalorder %s1590_s15, %s1649_s9 }
 0x6f3   : > { %p1152_p1 = scmp.lt.u32.totalorder %s1150_s28, %s1146_s30  ;;  %p1154_p6 = scmp.lt.u32.totalorder %s1146_s30, %s1590_s15 }
 0x6f4   : > { %p1148_p5 = pnand %p1147_p4, %p1656_p11 }
 0x6f5   : > { %p1153_p3 = por %p1152_p1, %p1151_p9 }
 0x6f6   : > { %p1149_p7 = pneg %p1148_p5 }
 0x6f7   : > { %p1155_p12 = por %p1154_p6, %p1153_p3 }
 0x6f9   : > { %p1156_p13 = pnand %p1155_p12, %p1149_p7 }
 0x6fb   : > { %1159 = shalt.err (!%p1156_p13)
}
 0x6fc   : > { %s1208_s17 = smov 256   ;;  %s1209_s25 = smov 16  }
 0x6fd   : > { %1040 = dma.vmem_to_hbm [thread:$0]  (%p1656_p11), %s1592_s24, 2048, %s1590_s15, %s857_s2, %s1208_s17, %s1208_s17, %s1209_s25  }
 0x6fe PF: > { %s885_s20 = sand.u32 1, %s1186_s11   ;;  %p1657_p8 = scmp.ne.s32.totalorder %s1654_s23, 0 }
 0x6ff   : > { %p1658_p10 = scmp.ge.s32.totalorder %s1198_s14, 2  ;;  %s886_s21 = scalar_lea.sflag [#allocation5], %s885_s20 }
 0x701   : > { %p1047_p0 = pnand %p1658_p10, %p1657_p8 }
 0x703   : > { %1181 = dma.done.wait (!%p1047_p0), %s886_s21, 2048  }
 0x704   : > { %1183 = vsyncadd (!%p1047_p0), %s886_s21, 4294965248  ;;  %p23_p2 = scmp.ge.s32.totalorder %s1288_s16, 4   ;;  %s1659_s11 = smov %s1190_s12 }
 0x705   : > { %s1660_s12 = smov %s1194_s13  ;;  %s1661_s13 = smov %s1300_s19 }
 0x706   : > { %s1662_s14 = smov %s1288_s16  ;;  %25 = sbr.rel (!%p23_p2) target bundleno = 7 (0x7), region = 101 }
 0x70d   :  { %891 = vsyncpa [#allocation4], 1 }
 0x70e   :  { %893 = vsyncpa [#allocation4 + $0x1], 1 }
 0x70f   :  { %894 = vsyncpa [#allocation5], 1 }
 0x710   :  { %896 = vsyncpa [#allocation5 + $0x1], 1 }

</bundles_post_ra>
